<compile_context>
chip_gen: v7x
topology: tpu7x:2x2x1
jax: 0.10.0
libtpu: 0.0.40
codegen_flags: <defaults>
</compile_context>

<pallas_src>
import math
import functools

import jax
import jax.numpy as jnp
from jax import lax
from jax.experimental import pallas as pl
from jax.experimental.pallas import tpu as pltpu


_MASK_VALUE = -1e30                 # large-negative mask (no -inf NaN hazards)
_VMEM_LIMIT = 48 * 1024 * 1024      # headroom under v7x 64 MiB; raise on v5e/v6e


def _sublane_align(dtype):
    """Second-minor tile alignment: 8 for 4-byte, 16 for bf16, 32 for int8/fp8."""
    return 8 * max(1, 4 // jnp.dtype(dtype).itemsize)


def _pick_tile(dim, cap, align):
    """Largest tile <= cap that divides `dim` and is a multiple of `align`;
    falls back to the full dimension (always a legal Mosaic block size)."""
    if dim <= cap:
        return dim
    t = (cap // align) * align
    while t >= align:
        if dim % t == 0:
            return t
        t -= align
    return dim


# --------------------- tiled linear:  x @ w + b -----------------------------

def _linear_wres_kernel(x_ref, w_ref, b_ref, o_ref):
    # Weight-resident: full K per block, no accumulator / init / finalize.
    o_ref[...] = (jnp.dot(x_ref[...], w_ref[...],
                          preferred_element_type=jnp.float32)
                  + b_ref[...].astype(jnp.float32)).astype(o_ref.dtype)


def _linear_ktiled_kernel(x_ref, w_ref, b_ref, o_ref, acc_ref):
    # Fallback for very large K: grid (M/tm, N/tn, K/tk), K reduction last.
    @pl.when(pl.program_id(2) == 0)
    def _init():
        acc_ref[...] = jnp.zeros_like(acc_ref)

    acc_ref[...] += jnp.dot(x_ref[...], w_ref[...],
                            preferred_element_type=jnp.float32)

    @pl.when(pl.program_id(2) == pl.num_programs(2) - 1)
    def _finalize():
        o_ref[...] = (acc_ref[...] + b_ref[...].astype(jnp.float32)
                      ).astype(o_ref.dtype)


def pallas_linear(x2d, w, b, *, tm_cap=512, tn_cap=512, tk_cap=512,
                  resident_k_cap=2048):
    """x2d: (M, K) @ w: (K, N) + b: (N,) -> (M, N)."""
    M, K = x2d.shape
    N = w.shape[1]
    sub = _sublane_align(x2d.dtype)
    tm = _pick_tile(M, tm_cap, sub)
    tn = _pick_tile(N, tn_cap, 128)
    b2 = b.reshape(1, N)

    if K <= resident_k_cap:
        # Weight-resident sweep: grid (N/tn, M/tm), M innermost so the w block
        # index (0, j) is constant across the whole M sweep -> w DMA'd once/j.
        grid = (N // tn, M // tm)
        return pl.pallas_call(
            _linear_wres_kernel,
            out_shape=jax.ShapeDtypeStruct((M, N), x2d.dtype),
            grid_spec=pltpu.PrefetchScalarGridSpec(
                num_scalar_prefetch=0,
                grid=grid,
                in_specs=[
                    pl.BlockSpec((tm, K), lambda j, i: (i, 0)),
                    pl.BlockSpec((K, tn), lambda j, i: (0, j)),
                    pl.BlockSpec((1, tn), lambda j, i: (0, j)),
                ],
                out_specs=pl.BlockSpec((tm, tn), lambda j, i: (i, j)),
            ),
            compiler_params=pltpu.CompilerParams(
                dimension_semantics=("parallel", "parallel"),
                vmem_limit_bytes=_VMEM_LIMIT,
            ),
        )(x2d, w, b2)

    # Large-K fallback: stream K with an fp32 VMEM accumulator.
    tk = _pick_tile(K, tk_cap, 128)
    grid = (M // tm, N // tn, K // tk)
    return pl.pallas_call(
        _linear_ktiled_kernel,
        out_shape=jax.ShapeDtypeStruct((M, N), x2d.dtype),
        grid_spec=pltpu.PrefetchScalarGridSpec(
            num_scalar_prefetch=0,
            grid=grid,
            in_specs=[
                pl.BlockSpec((tm, tk), lambda i, j, k: (i, k)),
                pl.BlockSpec((tk, tn), lambda i, j, k: (k, j)),
                pl.BlockSpec((1, tn), lambda i, j, k: (0, j)),
            ],
            out_specs=pl.BlockSpec((tm, tn), lambda i, j, k: (i, j)),
            scratch_shapes=[pltpu.VMEM((tm, tn), jnp.float32)],
        ),
        compiler_params=pltpu.CompilerParams(
            dimension_semantics=("parallel", "parallel", "arbitrary"),
            vmem_limit_bytes=_VMEM_LIMIT,
        ),
    )(x2d, w, b2)


# -------- output projection: contract (head, head_dim) of y against wp -------

def _head_proj_kernel(y_ref, w_ref, b_ref, o_ref, acc_ref, *, n_head):
    # y_ref: (1, H, tm, hd), w_ref: (H, hd, tn), b_ref: (1, tn), o_ref: (1, tm, tn)
    acc_ref[...] = jnp.dot(y_ref[0, 0], w_ref[0],
                           preferred_element_type=jnp.float32)
    for h in range(1, n_head):   # static, small head count
        acc_ref[...] += jnp.dot(y_ref[0, h], w_ref[h],
                                preferred_element_type=jnp.float32)
    o_ref[0] = (acc_ref[...] + b_ref[...].astype(jnp.float32)).astype(o_ref.dtype)


def pallas_head_proj(y, wp3, bp, *, tm_cap=512, tn_cap=512):
    """y: (B, H, T, hd) contracted with wp3: (H, hd, N) + bp -> (B, T, N).

    Reads y in its native head-major layout (no XLA transpose round trip) and
    writes a lane-dense (tm, tn) output block; the weight panel is resident
    across the whole (B, T) sweep."""
    B, H, T, hd = y.shape
    N = wp3.shape[2]
    sub = _sublane_align(y.dtype)
    tm = _pick_tile(T, tm_cap, sub)
    tn = _pick_tile(N, tn_cap, 128)

    kern = functools.partial(_head_proj_kernel, n_head=H)
    grid = (N // tn, B, T // tm)          # w index depends only on outermost j
    return pl.pallas_call(
        kern,
        out_shape=jax.ShapeDtypeStruct((B, T, N), y.dtype),
        grid_spec=pltpu.PrefetchScalarGridSpec(
            num_scalar_prefetch=0,
            grid=grid,
            in_specs=[
                pl.BlockSpec((1, H, tm, hd), lambda j, b, i: (b, 0, i, 0)),
                pl.BlockSpec((H, hd, tn), lambda j, b, i: (0, 0, j)),
                pl.BlockSpec((1, tn), lambda j, b, i: (0, j)),
            ],
            out_specs=pl.BlockSpec((1, tm, tn), lambda j, b, i: (b, i, j)),
            scratch_shapes=[pltpu.VMEM((tm, tn), jnp.float32)],
        ),
        compiler_params=pltpu.CompilerParams(
            dimension_semantics=("parallel", "parallel", "parallel"),
            vmem_limit_bytes=_VMEM_LIMIT,
        ),
    )(y, wp3, bp.reshape(1, N))


# ------------------ flash-style causal attention -----------------------------

def _flash_attn_kernel(past_ref, q_ref, k_ref, v_ref, o_ref,
                       m_ref, l_ref, acc_ref, *, tq, tkv):
    # q_ref: (1, 1, tq, hd)   k_ref/v_ref: (1, 1, tkv, hd)   o_ref: (1, 1, tq, hd)
    qi = pl.program_id(2)
    ki = pl.program_id(3)
    past = past_ref[0]

    @pl.when(ki == 0)
    def _init():
        m_ref[...] = jnp.full_like(m_ref, _MASK_VALUE)
        l_ref[...] = jnp.zeros_like(l_ref)
        acc_ref[...] = jnp.zeros_like(acc_ref)

    k_start = ki * tkv
    q_first = qi * tq + past                     # absolute pos of first query row
    q_last = q_first + (tq - 1)
    block_visible = k_start <= q_last            # some key in block is visible
    block_full = (k_start + (tkv - 1)) <= q_first  # every key visible to every row

    def scores():
        # q is already pre-scaled by 1/sqrt(hd) (folded into wq/bq).
        q = q_ref[0, 0]                          # (tq, hd)
        k = k_ref[0, 0]                          # (tkv, hd)
        return lax.dot_general(q, k, (((1,), (1,)), ((), ())),
                               preferred_element_type=jnp.float32)   # (tq, tkv)

    def update(s):
        m_prev = m_ref[...]                      # (tq, 1)
        m_new = jnp.maximum(m_prev, jnp.max(s, axis=-1, keepdims=True))
        alpha = jnp.exp(m_prev - m_new)
        p = jnp.exp(s - m_new)                   # (tq, tkv)
        l_ref[...] = alpha * l_ref[...] + jnp.sum(p, axis=-1, keepdims=True)
        acc_ref[...] = alpha * acc_ref[...] + jnp.dot(
            p.astype(v_ref.dtype), v_ref[0, 0],
            preferred_element_type=jnp.float32)
        m_ref[...] = m_new

    @pl.when(block_full)
    def _full():                                 # no mask work needed
        update(scores())

    @pl.when(jnp.logical_and(block_visible, jnp.logical_not(block_full)))
    def _diag():                                 # diagonal block: apply mask
        s = scores()
        q_pos = q_first + lax.broadcasted_iota(jnp.int32, (tq, tkv), 0)
        k_pos = k_start + lax.broadcasted_iota(jnp.int32, (tq, tkv), 1)
        s = jnp.where(k_pos <= q_pos, s, _MASK_VALUE)
        update(s)

    @pl.when(ki == pl.num_programs(3) - 1)
    def _finalize():
        # Exact divide once per q block (negligible cost, tight accuracy).
        o_ref[0, 0] = (acc_ref[...] / l_ref[...]).astype(o_ref.dtype)


def pallas_attention(q, k, v, past_len, *, tq_cap=256, tkv_cap=256):
    """q: (B, H, T, hd) [pre-scaled], k/v: (B, H, S, hd) -> (B, H, T, hd)."""
    B, H, T, hd = q.shape
    S = k.shape[2]
    sub = _sublane_align(q.dtype)
    tq = _pick_tile(T, tq_cap, sub)
    tkv = _pick_tile(S, tkv_cap, sub)

    kern = functools.partial(_flash_attn_kernel, tq=tq, tkv=tkv)

    def q_map(b, h, qi, ki, past_ref):
        return (b, h, qi, 0)

    def kv_map(b, h, qi, ki, past_ref):
        # Clamp to the last causally-visible kv block: fully masked blocks map
        # to the same block index as the previous step -> no new DMA is issued.
        last_visible = (qi * tq + (tq - 1) + past_ref[0]) // tkv
        return (b, h, jnp.minimum(ki, last_visible), 0)

    past = jnp.asarray([past_len], dtype=jnp.int32)   # scalar prefetch (SMEM)
    return pl.pallas_call(
        kern,
        out_shape=jax.ShapeDtypeStruct((B, H, T, hd), q.dtype),
        grid_spec=pltpu.PrefetchScalarGridSpec(
            num_scalar_prefetch=1,
            grid=(B, H, T // tq, S // tkv),
            in_specs=[
                pl.BlockSpec((1, 1, tq, hd), q_map),
                pl.BlockSpec((1, 1, tkv, hd), kv_map),
                pl.BlockSpec((1, 1, tkv, hd), kv_map),
            ],
            out_specs=pl.BlockSpec((1, 1, tq, hd), q_map),
            scratch_shapes=[
                pltpu.VMEM((tq, 1), jnp.float32),    # running max
                pltpu.VMEM((tq, 1), jnp.float32),    # running sum
                pltpu.VMEM((tq, hd), jnp.float32),   # output accumulator
            ],
        ),
        compiler_params=pltpu.CompilerParams(
            dimension_semantics=("parallel", "parallel", "parallel", "arbitrary"),
            vmem_limit_bytes=_VMEM_LIMIT,
        ),
    )(past, q, k, v)


# ------------------------ module forward ------------------------------------

def prepare_params(params, n_head):
    """One-time parameter prep: fuse QKV weights (with 1/sqrt(hd) folded into
    the Q columns) and reshape the projection weight to head-major."""
    C = params["wq"].shape[0]
    hd = C // n_head
    scale = 1.0 / math.sqrt(hd)
    w_qkv = jnp.concatenate(
        [params["wq"] * scale, params["wk"], params["wv"]], axis=1)
    b_qkv = jnp.concatenate(
        [params["bq"] * scale, params["bk"], params["bv"]], axis=0)
    wp3 = params["wp"].reshape(n_head, hd, C)       # contiguous, free reshape
    return {"w_qkv": w_qkv, "b_qkv": b_qkv, "wp3": wp3, "bp": params["bp"]}


def causal_self_attention(x, prepped, layer_past, n_head, *,
                          tq_cap=256, tkv_cap=256,
                          tm_cap=512, tn_cap=512):
    """Mirrors CausalSelfAttention.forward.  Returns (y, (k, v))."""
    B, T, C = x.shape
    hd = C // n_head
    x2 = x.reshape(B * T, C)

    # Fused QKV projection (weight-resident tiling); q columns are pre-scaled.
    qkv = pallas_linear(x2, prepped["w_qkv"], prepped["b_qkv"],
                        tm_cap=tm_cap, tn_cap=tn_cap)
    qkv = qkv.reshape(B, T, 3, n_head, hd)

    # Head-major layout (B, H, T, hd); k/v must be in this layout anyway for
    # the returned KV cache (module contract).
    q = qkv[:, :, 0].transpose(0, 2, 1, 3)
    k_new = qkv[:, :, 1].transpose(0, 2, 1, 3)
    v_new = qkv[:, :, 2].transpose(0, 2, 1, 3)

    if layer_past is not None:
        pk, pv = layer_past
        # TODO(synk): preallocate + in-place cache update (input_output_aliases)
        #             for decode instead of re-copying the whole cache per step.
        k = jnp.concatenate([pk, k_new], axis=2)
        v = jnp.concatenate([pv, v_new], axis=2)
    else:
        k, v = k_new, v_new

    past_len = k.shape[2] - T

    y = pallas_attention(q, k, v, past_len, tq_cap=tq_cap, tkv_cap=tkv_cap)
    # Output projection consumes y in its native (B, H, T, hd) layout.
    out = pallas_head_proj(y, prepped["wp3"], prepped["bp"],
                           tm_cap=tm_cap, tn_cap=tn_cap)
    # attn_drop / resid_drop are identity in the deterministic (eval) forward.
    return out, (k, v)


# ----------------------- reference (pure jnp) --------------------------------

def ref_forward(x, params, layer_past, n_head):
    B, T, C = x.shape
    hd = C // n_head

    def lin(a, w, b):
        return a @ w + b

    def split(a):
        return a.reshape(B, T, n_head, hd).transpose(0, 2, 1, 3)

    k = split(lin(x, params["wk"], params["bk"]))
    q = split(lin(x, params["wq"], params["bq"]))
    v = split(lin(x, params["wv"], params["bv"]))
    if layer_past is not None:
        pk, pv = layer_past
        k = jnp.concatenate([pk, k], axis=2)
        v = jnp.concatenate([pv, v], axis=2)
    S = k.shape[2]
    past_len = S - T
    att = jnp.einsum("bhtd,bhsd->bhts", q, k) / math.sqrt(hd)
    i = jnp.arange(T)[:, None]
    j = jnp.arange(S)[None, :]
    att = jnp.where(j <= i + past_len, att, -jnp.inf)
    att = jax.nn.softmax(att, axis=-1)
    y = jnp.einsum("bhts,bhsd->bhtd", att, v)
    y = y.transpose(0, 2, 1, 3).reshape(B, T, C)
    y = lin(y, params["wp"], params["bp"])
    return y, (k, v)


# ----------------------------- main ------------------------------------------

if __name__ == "__main__":
    C, n_head = 256, 4
    hd = C // n_head

    key = jax.random.PRNGKey(0)
    ks = jax.random.split(key, 16)
    wscale = 1.0 / math.sqrt(C)
    params = {
        "wk": jax.random.normal(ks[0], (C, C), jnp.float32) * wscale,
        "bk": jax.random.normal(ks[1], (C,), jnp.float32) * wscale,
        "wq": jax.random.normal(ks[2], (C, C), jnp.float32) * wscale,
        "bq": jax.random.normal(ks[3], (C,), jnp.float32) * wscale,
        "wv": jax.random.normal(ks[4], (C, C), jnp.float32) * wscale,
        "bv": jax.random.normal(ks[5], (C,), jnp.float32) * wscale,
        "wp": jax.random.normal(ks[6], (C, C), jnp.float32) * wscale,
        "bp": jax.random.normal(ks[7], (C,), jnp.float32) * wscale,
    }
    prepped = prepare_params(params, n_head)    # once, not per forward call

    # Small tile caps so this tiny test still exercises multi-block grids:
    # weight-resident N/M tiling in the linears, multi-step online softmax,
    # partially-masked (diagonal) key blocks, fully-visible key blocks, and
    # DMA-clamped fully-masked key blocks.
    tiles = dict(tq_cap=8, tkv_cap=8, tm_cap=8, tn_cap=256)

    Y_TOL = 5e-3
    KV_TOL = 1e-4

    def check(tag, got, want, tol):
        assert jnp.allclose(got, want, atol=tol, rtol=tol), f"{tag} mismatch"

    # ---- case 1: prefill with an existing KV cache (layer_past) -------------
    B, T, T_past = 2, 16, 16
    x = jax.random.normal(ks[8], (B, T, C), jnp.float32)
    pk = jax.random.normal(ks[9], (B, n_head, T_past, hd), jnp.float32)
    pv = jax.random.normal(ks[10], (B, n_head, T_past, hd), jnp.float32)

    y, (k_out, v_out) = causal_self_attention(x, prepped, (pk, pv), n_head, **tiles)
    y = jax.block_until_ready(y)
    k_out = jax.block_until_ready(k_out)
    v_out = jax.block_until_ready(v_out)
    y_r, (k_r, v_r) = ref_forward(x, params, (pk, pv), n_head)
    check("case1 y", y, y_r, Y_TOL)
    check("case1 k", k_out, k_r, KV_TOL)
    check("case1 v", v_out, v_r, KV_TOL)

    # ---- case 2: no past (pure causal self-attention) ------------------------
    B2, T2 = 2, 16
    x2 = jax.random.normal(ks[11], (B2, T2, C), jnp.float32)
    y2, (k2, v2) = causal_self_attention(x2, prepped, None, n_head, **tiles)
    y2 = jax.block_until_ready(y2)
    k2 = jax.block_until_ready(k2)
    v2 = jax.block_until_ready(v2)
    y2_r, (k2_r, v2_r) = ref_forward(x2, params, None, n_head)
    check("case2 y", y2, y2_r, Y_TOL)
    check("case2 k", k2, k2_r, KV_TOL)
    check("case2 v", v2, v2_r, KV_TOL)

    # ---- case 3: single-token decode step with a longer cache ----------------
    B3, T3, T_past3 = 2, 1, 24
    x3 = jax.random.normal(ks[12], (B3, T3, C), jnp.float32)
    pk3 = jax.random.normal(ks[13], (B3, n_head, T_past3, hd), jnp.float32)
    pv3 = jax.random.normal(ks[14], (B3, n_head, T_past3, hd), jnp.float32)
    y3, (k3, v3) = causal_self_attention(x3, prepped, (pk3, pv3), n_head, **tiles)
    y3 = jax.block_until_ready(y3)
    k3 = jax.block_until_ready(k3)
    v3 = jax.block_until_ready(v3)
    y3_r, (k3_r, v3_r) = ref_forward(x3, params, (pk3, pv3), n_head)
    check("case3 y", y3, y3_r, Y_TOL)
    check("case3 k", k3, k3_r, KV_TOL)
    check("case3 v", v3, v3_r, KV_TOL)

    print("KERNEL_OK")
</pallas_src>

<mosaic_0001>
module attributes {stable_mosaic.version = 11 : i64} {
  func.func @_linear_wres_kernel(%arg0: i32, %arg1: i32, %arg2: memref<8x256xf32, #tpu.memory_space<vmem>>, %arg3: memref<256x256xf32, #tpu.memory_space<vmem>>, %arg4: memref<1x256xf32, #tpu.memory_space<vmem>>, %arg5: memref<8x256xf32, #tpu.memory_space<vmem>>) attributes {dimension_semantics = [#tpu.dimension_semantics<parallel>, #tpu.dimension_semantics<parallel>], iteration_bounds = array<i64: 3, 4>, scalar_prefetch = 0 : i64, scratch_operands = 0 : i64, tpu.core_type = #tpu.core_type<tc>, window_params = [{transform_indices = @transform_0, window_bounds = array<i64: 8, 256>}, {transform_indices = @transform_1, window_bounds = array<i64: 256, 256>}, {transform_indices = @transform_2, window_bounds = array<i64: 1, 256>}, {transform_indices = @transform_3, window_bounds = array<i64: 8, 256>}]} {
    %c0 = arith.constant 0 : index
    %c0_0 = arith.constant 0 : index
    %0 = vector.load %arg2[%c0, %c0_0] : memref<8x256xf32, #tpu.memory_space<vmem>>, vector<8x256xf32>
    %c0_1 = arith.constant 0 : index
    %c0_2 = arith.constant 0 : index
    %1 = vector.load %arg3[%c0_1, %c0_2] : memref<256x256xf32, #tpu.memory_space<vmem>>, vector<256x256xf32>
    %cst = arith.constant dense<0.000000e+00> : vector<8x256xf32>
    %2 = tpu.matmul %0, %1, %cst {dimension_numbers = #tpu.dot_dimension_numbers<[1], [0], [0], [1], [0, 0, 1, 1], [], []>} : vector<8x256xf32>, vector<256x256xf32>, vector<8x256xf32> -> vector<8x256xf32>
    %c0_3 = arith.constant 0 : index
    %c0_4 = arith.constant 0 : index
    %3 = vector.load %arg4[%c0_3, %c0_4] : memref<1x256xf32, #tpu.memory_space<vmem>>, vector<1x256xf32>
    %4 = vector.broadcast %3 : vector<1x256xf32> to vector<8x256xf32>
    %5 = arith.addf %2, %4 : vector<8x256xf32>
    %c0_5 = arith.constant 0 : index
    %c0_6 = arith.constant 0 : index
    %6 = vector.load %arg5[%c0_5, %c0_6] : memref<8x256xf32, #tpu.memory_space<vmem>>, vector<8x256xf32>
    tpu.vector_store %arg5[%c0_5, %c0_6], %5 {strides = array<i32>} : memref<8x256xf32, #tpu.memory_space<vmem>>, vector<8x256xf32>,
    return
  }
  func.func @transform_0(%arg0: i32, %arg1: i32) -> (i32, i32) {
    %c0_i32 = arith.constant 0 : i32
    %c0_i32_0 = arith.constant 0 : i32
    return %arg1, %c0_i32 : i32, i32
  }
  func.func @transform_1(%arg0: i32, %arg1: i32) -> (i32, i32) {
    %c0_i32 = arith.constant 0 : i32
    %c0_i32_0 = arith.constant 0 : i32
    return %c0_i32, %arg0 : i32, i32
  }
  func.func @transform_2(%arg0: i32, %arg1: i32) -> (i32, i32) {
    %c0_i32 = arith.constant 0 : i32
    %c0_i32_0 = arith.constant 0 : i32
    return %c0_i32, %arg0 : i32, i32
  }
  func.func @transform_3(%arg0: i32, %arg1: i32) -> (i32, i32) {
    %c0_i32 = arith.constant 0 : i32
    return %arg1, %arg0 : i32, i32
  }
}

</mosaic_0001>

<bundles_post_ra>
// kernel: tpu_custom_call.1
= control target key start
LH: loop header
LB: loop body
LE: loop exit
PB: predicated region body
PF: predicated region fallthrough
CT: control target
= control target key end

     0   :  { %s1409_s0 = inlined_call_operand.hbm [shape: f32[32,256], index: 0, kind: input, shape index: {}]   ;;  %s1410_s1 = inlined_call_operand.hbm [shape: f32[256,768], index: 1, kind: input, shape index: {}]   ;;  %s1411_s2 = inlined_call_operand.vmem [shape: f32[1,768], index: 2, kind: input, shape index: {}]   ;;  %s1412_s3 = inlined_call_operand.hbm [shape: f32[32,768], index: 3, kind: output, shape index: {}]  }
   0x1   :  { %1420 = sst [smem:[#allocation18_spill]] %s1409_s0 }
   0x2   :  { %8 = vsyncpa [#allocation3], 0 }
   0x3   :  { %10 = vsyncpa [#allocation3 + $0x1], 0 }
   0x4   :  { %11 = vsyncpa [#allocation6], 0 }
   0x5   :  { %13 = vsyncpa [#allocation6 + $0x1], 0 }
   0x6   :  { %14 = vsyncpa [#allocation4], 0 }
   0x7   :  { %16 = vsyncpa [#allocation4 + $0x1], 0  ;;  %s1005_s12 = smov 0   ;;  %s1007_s13 = smov 0  }
   0x8   :  { %s1009_s14 = smov 0   ;;  %s1011_s15 = smov 0  }
   0x9   :  { %s1013_s16 = smov 0   ;;  %s1015_s17 = smov 0  }
   0xa   :  { %s1017_s18 = smov 0   ;;  %s1019_s19 = smov 0  }
   0xb   :  { %s1021_s20 = smov 0   ;;  %s1023_s21 = smov 0  }
   0xc   :  { %s1025_s22 = smov 0   ;;  %s1027_s23 = smov 0  }
   0xd   :  { %s1029_s24 = smov 0   ;;  %s1031_s25 = smov 0  }
   0xe LB: > { %1421 = sst [smem:[#allocation11_spill]] %s969_s23  ;;  %s546_s26 = sadd.s32 4294967295, %s977_s25   ;;  %s977_s25 = sphi %s1031_s25, %s22_s25   ;;  %s973_s24 = sphi %s1029_s24, %s1452_s24   ;;  %s969_s23 = sphi %s1027_s23, %s1451_s23   ;;  %s965_s22 = sphi %s1025_s22, %s1463_s22   ;;  %s961_s21 = sphi %s1023_s21, %s1449_s21   ;;  %s957_s20 = sphi %s1021_s20, %s1462_s20   ;;  %s953_s19 = sphi %s1019_s19, %s1461_s19   ;;  %s949_s18 = sphi %s1017_s18, %s1460_s18   ;;  %s945_s17 = sphi %s1015_s17, %s1459_s17   ;;  %s941_s16 = sphi %s1013_s16, %s1458_s16   ;;  %s937_s15 = sphi %s1011_s15, %s1457_s15   ;;  %s933_s14 = sphi %s1009_s14, %s1456_s14   ;;  %s929_s13 = sphi %s1007_s13, %s1455_s13   ;;  %s925_s12 = sphi %s1005_s12, %s1454_s12  }
   0xf   : > { %1422 = sst [smem:[#allocation12_spill]] %s973_s24  ;;  %s31_s28 = sadd.s32 1, %s969_s23 }
  0x10   : > { %s34_s29 = sadd.s32 1, %s973_s24  ;;  %p32_p0 = scmp.ge.s32.totalorder %s31_s28, 4 }
  0x11   : > { %s41_s30 = sadd.s32 1, %s957_s20  ;;  %p48_p1 = scmp.ne.s32.totalorder %s957_s20, %s953_s19 }
  0x12   : > { %p49_p2 = scmp.eq.s32.totalorder %s977_s25, 0  ;;  %s1465_s28 = smov (%p32_p0, %s31_s28), 0 }
  0x13   : > { %1423 = sst [smem:[#allocation13_spill]] %s1465_s28  ;;  %s1467_s29 = smov (!%p32_p0, %s34_s29), %s973_s24 }
  0x14   : > { %s38_s4 = ssub.s32 %s969_s23, %s1465_s28  ;;  %p1088_p3 = por %p49_p2, %p48_p1 }
  0x15   : > { %p36_p4 = scmp.ge.s32.totalorder %s1467_s29, 3  ;;  %p39_p5 = scmp.eq.s32.totalorder %s38_s4, 0 }
  0x16   : > { %p54_p6 = scmp.ne.s32.totalorder %s953_s19, %s949_s18  ;;  %p55_p7 = scmp.eq.s32.totalorder %s546_s26, 0 }
  0x17   : > { %s1469_s29 = smov (%p36_p4, %s1467_s29), 0  ;;  %s67_s9 = sadd.s32 1, %s945_s17 }
  0x18   : > { %1425 = sst [smem:[#allocation14_spill]] %s1469_s29  ;;  %p1100_p8 = por %p55_p7, %p54_p6 }
  0x19   : > { %s1098_s6 = scalar_select %p39_p5, %s957_s20, %s41_s30  }
  0x1a   : > { %s1427_s7 = scalar_select %p1100_p8, 1, 0 }
  0x1b   : > { %1426 = sst [smem:[#allocation15_spill]] %s1098_s6  ;;  %s64_s8 = ssub.s32 %s973_s24, %s1469_s29 }
  0x1c   : > { %p65_p9 = scmp.eq.s32.totalorder %s64_s8, 0  ;;  %p74_p10 = scmp.ne.s32.totalorder %s945_s17, %s941_s16 }
  0x1d   : > { %p80_p11 = scmp.ne.s32.totalorder %s941_s16, %s937_s15  ;;  %s118_s30 = sor.u32 %s64_s8, %s38_s4 }
  0x1e   : > { %s1112_s10 = scalar_select %p65_p9, %s945_s17, %s67_s9  }
  0x1f   : > { %p1116_p12 = por %p74_p10, %p49_p2  ;;  %p1120_p13 = por %p80_p11, %p55_p7 }
  0x20   : > { %1428 = sst [smem:[#allocation16_spill]] %s1112_s10  ;;  %s121_s27 = sadd.s32 1, %s933_s14 }
  0x21   : > { %s1430_s18 = scalar_select %p1120_p13, 1, 0 }
  0x22   : > { %p119_p0 = scmp.eq.s32.totalorder %s118_s30, 0  ;;  %p131_p1 = scmp.ne.s32.totalorder %s933_s14, %s929_s13 }
  0x23   : > { %p132_p4 = scmp.eq.s32.totalorder %s546_s26, 11  ;;  %p137_p5 = scmp.ne.s32.totalorder %s929_s13, %s925_s12 }
  0x24   : > { %s1132_s15 = scalar_select %p119_p0, %s933_s14, %s121_s27  }
  0x25   : > { %p1134_p2 = por %p132_p4, %p131_p1  ;;  %s1433_s29 = sadd.s32 4294967294, %s977_s25  }
  0x26   : > { %1431 = sst [smem:[#allocation17_spill]] %s1132_s15  ;;  %p138_p6 = scmp.eq.s32.totalorder %s1433_s29, 11 }
  0x27   : > { %s1432_s9 = scalar_select %p1134_p2, 1, 0 }
  0x28   : > { %p650_p7 = scmp.lt.s32.totalorder %s977_s25, 12  ;;  %p1141_p9 = por %p138_p6, %p137_p5 }
  0x29   : > { %s158_s8 = sand.u32 1, %s957_s20   ;;  %s566_s28 = sshll.u32 %s969_s23, 8 }
  0x2a   : > { %s1434_s4 = scalar_select %p1141_p9, 1, 0 }
  0x2b   : > { %s550_s30 = sshll.u32 %s158_s8, 4  ;;  %s1435_s0 = sld [smem:[#allocation18_spill]] }
  0x2c   : > { %s162_s27 = scalar_lea.vmem [#allocation2], %s550_s30  ;;  %p1156_p10 = pnand %p650_p7, %p1088_p3 }
  0x2d   : > { %s170_s15 = sshll.u32 %s162_s27, 4  ;;  %p1162_p11 = pnand %p650_p7, %p1116_p12  ;;  %s1152_s15 = int_to_ptr.vmem [resolvable:$true] %s170_s15 }
  0x2e   : > { %p769_p5 = pneg %p1156_p10 }
  0x31   : > { %s1150_s10 = scalar_lea.hbm %s1435_s0, %s566_s28  ;;  %s159_s28 = scalar_lea.sflag [#allocation3], %s158_s8 }
  0x32   : > { %s767_s30 = scalar_lea.hbm %s1150_s10, 256  ;;  %s772_s11 = scalar_lea.hbm %s1435_s0, 1024 }
  0x33   : > { %p768_p4 = scmp.ne.s32.totalorder %s1150_s10, %s767_s30  ;;  %p773_p12 = scmp.lt.u32.totalorder %s1150_s10, %s1435_s0 }
  0x34   : > { %p774_p7 = scmp.lt.u32.totalorder %s772_s11, %s767_s30  ;;  %p776_p1 = scmp.lt.u32.totalorder %s767_s30, %s1150_s10 }
  0x35   : > { %p770_p3 = pnand %p769_p5, %p768_p4 }
  0x36   : > { %p775_p0 = por %p774_p7, %p773_p12 }
  0x37   : > { %p771_p6 = pneg %p770_p3 }
  0x38   : > { %p777_p9 = por %p776_p1, %p775_p0 }
  0x3a   : > { %p778_p2 = pnand %p777_p9, %p771_p6 }
  0x3c   : > { %781 = shalt.err (!%p778_p2)
}
  0x3d   : > { %s782_s8 = scalar_lea.vmem %s1152_s15, 256  ;;  %s979_s5 = smov [#allocation2]  }
  0x3e   : > { %p783_p4 = scmp.ne.s32.totalorder %s1152_s15, %s782_s8  ;;  %s787_s26 = sshll.u32 %s979_s5, 4  ;;  %s788_s26 = int_to_ptr.vmem [resolvable:$false] %s787_s26 }
  0x3f   : > { %s789_s23 = scalar_lea.vmem %s788_s26, 512  ;;  %p790_p8 = scmp.lt.s32.totalorder %s1152_s15, %s788_s26 }
  0x40   : > { %p785_p3 = pnand %p783_p4, %p769_p5  ;;  %p791_p12 = scmp.lt.s32.totalorder %s789_s23, %s782_s8 }
  0x42   : > { %p786_p13 = pneg %p785_p3  ;;  %p792_p7 = por %p791_p12, %p790_p8 }
  0x44   : > { %p793_p0 = pnand %p792_p7, %p786_p13 }
  0x46   : > { %796 = shalt.err (!%p793_p0)
}
  0x47   : > { %642 = dma.hbm_to_vmem [thread:$0]  (!%p1156_p10), %s1150_s10, 256, %s1152_s15, %s159_s28  }
  0x48   : > { %p1438_p2 = scmp.lt.s32.totalorder %s977_s25, 13  ;;  %p1439_p9 = scmp.ge.s32.totalorder %s977_s25, 1 }
  0x49   : > { %s177_s11 = sand.u32 1, %s945_s17   ;;  %s567_s27 = sshll.u32 %s973_s24, 8 }
  0x4a   : > { %p1197_p1 = pnand %p1439_p9, %p1438_p2  ;;  %s553_s8 = sshll.u32 %s177_s11, 9 }
  0x4b   : > { %s1206_s26 = scalar_lea.hbm %s1410_s1, %s567_s27  ;;  %s181_s23 = scalar_lea.vmem [#allocation5], %s553_s8 }
  0x4c   : > { %s188_s10 = sshll.u32 %s181_s23, 4  ;;  %s1210_s15 = scalar_lea.sflag [#allocation6], %s177_s11  ;;  %s1208_s10 = int_to_ptr.vmem [resolvable:$true] %s188_s10 }
  0x4d   : > { %s797_s28 = scalar_lea.hbm %s1206_s26, 8192  ;;  %p799_p13 = pneg %p1162_p11 }
  0x4e   : > { %p798_p8 = scmp.ne.s32.totalorder %s1206_s26, %s797_s28  ;;  %s802_s29 = scalar_lea.hbm %s1410_s1, 24576 }
  0x4f   : > { %p803_p6 = scmp.lt.u32.totalorder %s1206_s26, %s1410_s1  ;;  %p804_p4 = scmp.lt.u32.totalorder %s802_s29, %s797_s28 }
  0x50   : > { %p800_p10 = pnand %p799_p13, %p798_p8  ;;  %p806_p12 = scmp.lt.u32.totalorder %s797_s28, %s1206_s26 }
  0x51   : > { %p805_p3 = por %p804_p4, %p803_p6 }
  0x52   : > { %p801_p5 = pneg %p800_p10 }
  0x53   : > { %p807_p7 = por %p806_p12, %p805_p3 }
  0x55   : > { %p808_p0 = pnand %p807_p7, %p801_p5 }
  0x57   : > { %811 = shalt.err (!%p808_p0)
}
  0x58   : > { %s812_s11 = scalar_lea.vmem %s1208_s10, 8192  ;;  %s980_s8 = smov [#allocation5]  }
  0x59   : > { %p813_p2 = scmp.ne.s32.totalorder %s1208_s10, %s812_s11  ;;  %s817_s23 = sshll.u32 %s980_s8, 4  ;;  %s818_s23 = int_to_ptr.vmem [resolvable:$false] %s817_s23 }
  0x5a   : > { %s819_s0 = scalar_lea.vmem %s818_s23, 16384  ;;  %p820_p10 = scmp.lt.s32.totalorder %s1208_s10, %s818_s23 }
  0x5b   : > { %p815_p9 = pnand %p813_p2, %p799_p13  ;;  %p821_p6 = scmp.lt.s32.totalorder %s819_s0, %s812_s11 }
  0x5d   : > { %p816_p8 = pneg %p815_p9  ;;  %p822_p4 = por %p821_p6, %p820_p10 }
  0x5f   : > { %p823_p3 = pnand %p822_p4, %p816_p8 }
  0x61   : > { %826 = shalt.err (!%p823_p3)
}
  0x62   : > { %s981_s24 = smov 768   ;;  %s982_s28 = smov 256  }
  0x63   : > { %s983_s27 = smov 16   ;;  %208 = sbr.rel (%p1197_p1) target bundleno = 407 (0x197), region = 32 }
  0x64   : > { %645 = dma.hbm_to_vmem [thread:$0]  (!%p1162_p11), %s1206_s26, 8192, %s1208_s10, %s1210_s15, %s981_s24, %s982_s28, %s983_s27  }
  0x65   : > { %s210_s5 = sand.u32 (!%p1197_p1), 1, %s953_s19   ;;  %p1441_p13 = scmp.ne.s32.totalorder (!%p1197_p1), %s1427_s7, 0 }
  0x66   : > { %s1241_s29 = sshll.u32 (!%p1197_p1), %s210_s5, 4  ;;  %s211_s11 = scalar_lea.sflag (!%p1197_p1), [#allocation3], %s210_s5 }
  0x67   : > { %s214_s8 = scalar_lea.vmem (!%p1197_p1), [#allocation2], %s1241_s29 }
  0x6a   : > { %912 = dma.done.wait (%p1441_p13), %s211_s11, 256  }
  0x6b   : > { %914 = vsyncadd (%p1441_p13), %s211_s11, 4294967040  ;;  %s219_s6 = sand.u32 1, %s941_s16   ;;  %p1442_p11 = scmp.ne.s32.totalorder %s1430_s18, 0 }
  0x6c   : > { %s558_s26 = sshll.u32 %s219_s6, 9  ;;  %s220_s10 = scalar_lea.sflag [#allocation6], %s219_s6 }
  0x6d   : > { %s1249_s30 = scalar_lea.vmem [#allocation5], %s558_s26 }
  0x6e   : > { %916 = dma.done.wait (%p1442_p11), %s220_s10, 8192  }
  0x6f   : > { %918 = vsyncadd (%p1442_p11), %s220_s10, 4294959104  ;;  %v265_v0 = vld [vmem:[%s1249_s30 + $0x8] sm:$0xff]  ;;  %v267_v1 = vld [vmem:[%s1249_s30 + $0x18] sm:$0xff]  ;;  %s560_s7 = sshll.u32 %s965_s22, 1  ;;  %s252_s15 = sand.u32 1, %s929_s13  }
  0x70   : > { %v264_v2 = vld [vmem:[%s1249_s30] sm:$0xff]  ;;  %v568_v3 = vpack.c.bf16 %v267_v1, %v265_v0  ;;  %v266_v4 = vld [vmem:[%s1249_s30 + $0x10] sm:$0xff]  ;;  %v269_v5 = vld [vmem:[%s1249_s30 + $0x28] sm:$0xff]  ;;  %p257_p1 = scmp.lt.s32.totalorder %s560_s7, 5  ;;  %s632_s28 = smul.u32 6, %s961_s21 }
  0x71   : > { %v271_v6 = vld [vmem:[%s1249_s30 + $0x38] sm:$0xff]  ;;  %v570_v7 = vpack.c.bf16 %v266_v4, %v264_v2  ;;  %v268_v9 = vld [vmem:[%s1249_s30 + $0x20] sm:$0xff]  ;;  %v270_v10 = vld [vmem:[%s1249_s30 + $0x30] sm:$0xff]  ;;  %s559_s27 = sshll.u32 %s252_s15, 4  ;;  %s414_s21 = scalar_lea.sflag [#allocation4], %s252_s15 }
  0x72   : > { %v572_v8 = vpack.c.bf16 %v271_v6, %v269_v5  ;;  %v273_v11 = vld [vmem:[%s1249_s30 + $0x48] sm:$0xff]  ;;  %569 = vmatprep.subr.bf16.mxu0 %v568_v3  ;;  %v275_v12 = vld [vmem:[%s1249_s30 + $0x58] sm:$0xff]  ;;  %v574_v13 = vpack.c.bf16 %v270_v10, %v268_v9  ;;  %v272_v15 = vld [vmem:[%s1249_s30 + $0x40] sm:$0xff]  ;;  %s258_s18 = scalar_select %p257_p1, %s560_s7, 5 }
  0x73   : > { %571 = vmatpush1.bf16.msra.mxu0 %v570_v7  ;;  %v576_v14 = vpack.c.bf16 %v275_v12, %v273_v11  ;;  %v274_v16 = vld [vmem:[%s1249_s30 + $0x50] sm:$0xff]  ;;  %v277_v17 = vld [vmem:[%s1249_s30 + $0x68] sm:$0xff]  ;;  %v279_v18 = vld [vmem:[%s1249_s30 + $0x78] sm:$0xff]  ;;  %s426_s5 = sadd.s32 %s632_s28, %s560_s7  ;;  %s254_s22 = scalar_lea.vmem [#allocation7], %s559_s27 }
  0x74   : > { %573 = vmatprep.subr.bf16.mxu0 %v572_v8  ;;  %v578_v19 = vpack.c.bf16 %v274_v16, %v272_v15  ;;  %v580_v20 = vpack.c.bf16 %v279_v18, %v277_v17  ;;  %v276_v21 = vld [vmem:[%s1249_s30 + $0x60] sm:$0xff]  ;;  %v278_v22 = vld [vmem:[%s1249_s30 + $0x70] sm:$0xff]  ;;  %v281_v23 = vld [vmem:[%s1249_s30 + $0x88] sm:$0xff]  ;;  %s259_s24 = scalar_lea.vmem %s1411_s2, %s258_s18  ;;  %s563_s29 = sshll.u32 %s426_s5, 7 }
  0x75   : > { %v283_v24 = vld [vmem:[%s1249_s30 + $0x98] sm:$0xff]  ;;  %v582_v25 = vpack.c.bf16 %v278_v22, %v276_v21  ;;  %v280_v27 = vld [vmem:[%s1249_s30 + $0x80] sm:$0xff]  ;;  %v282_v28 = vld [vmem:[%s1249_s30 + $0x90] sm:$0xff]  ;;  %s430_s11 = sshll.u32 %s254_s22, 4  ;;  %s1332_s26 = scalar_lea.hbm %s1412_s3, %s563_s29  ;;  %s1334_s11 = int_to_ptr.vmem [resolvable:$true] %s430_s11 }
  0x76   : > { %v584_v26 = vpack.c.bf16 %v283_v24, %v281_v23  ;;  %v285_v29 = vld [vmem:[%s1249_s30 + $0xa8] sm:$0xff]  ;;  %v287_v30 = vld [vmem:[%s1249_s30 + $0xb8] sm:$0xff]  ;;  %v586_v31 = vpack.c.bf16 %v282_v28, %v280_v27  ;;  %v284_v33 = vld [vmem:[%s1249_s30 + $0xa0] sm:$0xff]  ;;  %s827_s10 = scalar_lea.vmem %s1334_s11, 256  ;;  %p1443_p12 = scmp.ne.s32.totalorder %s1432_s9, 0 }
  0x77   : > { %575 = vmatpush1.bf16.msra.mxu0 %v574_v13  ;;  %v588_v32 = vpack.c.bf16 %v287_v30, %v285_v29  ;;  %v286_v34 = vld [vmem:[%s1249_s30 + $0xb0] sm:$0xff]  ;;  %v289_v35 = vld [vmem:[%s1249_s30 + $0xc8] sm:$0xff]  ;;  %v291_v36 = vld [vmem:[%s1249_s30 + $0xd8] sm:$0xff]  ;;  %p828_p5 = scmp.ne.s32.totalorder %s1334_s11, %s827_s10 }
  0x78   : > { %577 = vmatprep.subr.bf16.mxu0 %v576_v14  ;;  %v590_v37 = vpack.c.bf16 %v286_v34, %v284_v33  ;;  %v592_v38 = vpack.c.bf16 %v291_v36, %v289_v35  ;;  %v288_v39 = vld [vmem:[%s1249_s30 + $0xc0] sm:$0xff]  ;;  %v290_v40 = vld [vmem:[%s1249_s30 + $0xd0] sm:$0xff]  ;;  %v263_v41 = vld [vmem:[%s214_s8 + $0x8] sm:$0xff]  ;;  %v330_v34 = vlaneseq }
  0x79   : > { %v293_v42 = vld [vmem:[%s1249_s30 + $0xe8] sm:$0xff]  ;;  %v295_v43 = vld [vmem:[%s1249_s30 + $0xf8] sm:$0xff]  ;;  %404 = vmatprep.mubr.f32.mxu0 %v263_v41  ;;  %v594_v44 = vpack.c.bf16 %v290_v40, %v288_v39  ;;  %v292_v46 = vld [vmem:[%s1249_s30 + $0xe0] sm:$0xff]  ;;  %p829_p7 = pnand %p828_p5, %p1443_p12 }
  0x7a   : > { %v596_v45 = vpack.c.bf16 %v295_v43, %v293_v42  ;;  %v294_v47 = vld [vmem:[%s1249_s30 + $0xf0] sm:$0xff]  ;;  %v297_v48 = vld [vmem:[%s1249_s30 + $0x108] sm:$0xff]  ;;  %v299_v49 = vld [vmem:[%s1249_s30 + $0x118] sm:$0xff]  ;;  %v331_v35 = vshrl.u32 %v330_v34, 7 }
  0x7b   : > { %579 = vmatpush1.bf16.msra.mxu0 %v578_v19  ;;  %v598_v50 = vpack.c.bf16 %v294_v47, %v292_v46  ;;  %v600_v51 = vpack.c.bf16 %v299_v49, %v297_v48  ;;  %v296_v52 = vld [vmem:[%s1249_s30 + $0x100] sm:$0xff]  ;;  %v298_v53 = vld [vmem:[%s1249_s30 + $0x110] sm:$0xff]  ;;  %v301_v54 = vld [vmem:[%s1249_s30 + $0x128] sm:$0xff]  ;;  %p830_p0 = pneg %p829_p7 }
  0x7c   : > { %581 = vmatprep.subr.bf16.mxu0 %v580_v20  ;;  %v303_v55 = vld [vmem:[%s1249_s30 + $0x138] sm:$0xff]  ;;  %v602_v56 = vpack.c.bf16 %v298_v53, %v296_v52  ;;  %v300_v58 = vld [vmem:[%s1249_s30 + $0x120] sm:$0xff]  ;;  %v302_v59 = vld [vmem:[%s1249_s30 + $0x130] sm:$0xff]  ;;  %v332_v36 = vsub.s32 0, %v331_v35 }
  0x7d   : > { %v604_v57 = vpack.c.bf16 %v303_v55, %v301_v54  ;;  %v305_v60 = vld [vmem:[%s1249_s30 + $0x148] sm:$0xff]  ;;  %v307_v61 = vld [vmem:[%s1249_s30 + $0x158] sm:$0xff]  ;;  %v606_v62 = vpack.c.bf16 %v302_v59, %v300_v58  ;;  %v304_v0 = vld [vmem:[%s1249_s30 + $0x140] sm:$0xff] }
  0x7e   : > { %v608_v63 = vpack.c.bf16 %v307_v61, %v305_v60  ;;  %v306_v1 = vld [vmem:[%s1249_s30 + $0x150] sm:$0xff]  ;;  %v309_v2 = vld [vmem:[%s1249_s30 + $0x168] sm:$0xff]  ;;  %v311_v3 = vld [vmem:[%s1249_s30 + $0x178] sm:$0xff] }
  0x7f   : > { %583 = vmatpush1.bf16.msra.mxu0 %v582_v25  ;;  %v610_v4 = vpack.c.bf16 %v306_v1, %v304_v0  ;;  %v612_v5 = vpack.c.bf16 %v311_v3, %v309_v2  ;;  %v308_v6 = vld [vmem:[%s1249_s30 + $0x160] sm:$0xff]  ;;  %v310_v7 = vld [vmem:[%s1249_s30 + $0x170] sm:$0xff]  ;;  %v313_v8 = vld [vmem:[%s1249_s30 + $0x188] sm:$0xff] }
  0x80   : > { %585 = vmatprep.subr.bf16.mxu0 %v584_v26  ;;  %v315_v9 = vld [vmem:[%s1249_s30 + $0x198] sm:$0xff]  ;;  %v614_v10 = vpack.c.bf16 %v310_v7, %v308_v6  ;;  %v312_v12 = vld [vmem:[%s1249_s30 + $0x180] sm:$0xff]  ;;  %v314_v13 = vld [vmem:[%s1249_s30 + $0x190] sm:$0xff] }
  0x81   : > { %v616_v11 = vpack.c.bf16 %v315_v9, %v313_v8  ;;  %v317_v14 = vld [vmem:[%s1249_s30 + $0x1a8] sm:$0xff]  ;;  %v319_v15 = vld [vmem:[%s1249_s30 + $0x1b8] sm:$0xff]  ;;  %v618_v16 = vpack.c.bf16 %v314_v13, %v312_v12  ;;  %v316_v18 = vld [vmem:[%s1249_s30 + $0x1a0] sm:$0xff] }
  0x82   : > { %v620_v17 = vpack.c.bf16 %v319_v15, %v317_v14  ;;  %v318_v19 = vld [vmem:[%s1249_s30 + $0x1b0] sm:$0xff]  ;;  %v321_v20 = vld [vmem:[%s1249_s30 + $0x1c8] sm:$0xff]  ;;  %v323_v21 = vld [vmem:[%s1249_s30 + $0x1d8] sm:$0xff] }
  0x83   : > { %587 = vmatpush1.bf16.msra.mxu0 %v586_v31  ;;  %v622_v22 = vpack.c.bf16 %v318_v19, %v316_v18  ;;  %v624_v23 = vpack.c.bf16 %v323_v21, %v321_v20  ;;  %v320_v24 = vld [vmem:[%s1249_s30 + $0x1c0] sm:$0xff]  ;;  %v322_v25 = vld [vmem:[%s1249_s30 + $0x1d0] sm:$0xff]  ;;  %v325_v26 = vld [vmem:[%s1249_s30 + $0x1e8] sm:$0xff] }
  0x84   : > { %589 = vmatprep.subr.bf16.mxu0 %v588_v32  ;;  %v327_v27 = vld [vmem:[%s1249_s30 + $0x1f8] sm:$0xff]  ;;  %v626_v28 = vpack.c.bf16 %v322_v25, %v320_v24  ;;  %v324_v30 = vld [vmem:[%s1249_s30 + $0x1e0] sm:$0xff]  ;;  %v326_v31 = vld [vmem:[%s1249_s30 + $0x1f0] sm:$0xff]  ;;  %s984_s30 = smov [#allocation7]  }
  0x85   : > { %v628_v29 = vpack.c.bf16 %v327_v27, %v325_v26  ;;  %v630_v32 = vpack.c.bf16 %v326_v31, %v324_v30  ;;  %v262_v33 = vld [vmem:[%s214_s8] sm:$0xff]  ;;  %s831_s7 = sshll.u32 %s984_s30, 4  ;;  %s832_s7 = int_to_ptr.vmem [resolvable:$false] %s831_s7 }
  0x86   : > { %s833_s18 = scalar_lea.vmem %s832_s7, 512  ;;  %p834_p2 = scmp.lt.s32.totalorder %s1334_s11, %s832_s7 }
  0x87   : > { %591 = vmatpush1.bf16.msra.mxu0 %v590_v37  ;;  %v328_v37 = vld [vmem:[%s259_s24] sm:$0x3]  ;;  %p835_p9 = scmp.lt.s32.totalorder %s833_s18, %s827_s10 }
  0x88   : > { %593 = vmatprep.subr.bf16.mxu0 %v592_v38  ;;  %v336_v38 = vsub.s32 1, %v331_v35  ;;  %v333_v39 = vrot.slane %v328_v37, %v332_v36 }
  0x89   : > { %p836_p8 = por %p835_p9, %p834_p2 }
  0x8a   : > { %v337_v40 = vrot.slane %v328_v37, %v336_v38 }
  0x8b   : > { %595 = vmatpush1.bf16.msra.mxu0 %v594_v44  ;;  %p837_p10 = pnand %p836_p8, %p830_p0 }
  0x8c   : > { %597 = vmatprep.subr.bf16.mxu0 %v596_v45 }
  0x8f   : > { %599 = vmatpush1.bf16.msra.mxu0 %v598_v50 }
  0x90   : > { %601 = vmatprep.subr.bf16.mxu0 %v600_v51 }
  0x93   : > { %603 = vmatpush1.bf16.msra.mxu0 %v602_v56 }
  0x94   : > { %605 = vmatprep.subr.bf16.mxu0 %v604_v57 }
  0x97   : > { %607 = vmatpush1.bf16.msra.mxu0 %v606_v62 }
  0x98   : > { %609 = vmatprep.subr.bf16.mxu0 %v608_v63 }
  0x9b   : > { %611 = vmatpush1.bf16.msra.mxu0 %v610_v4 }
  0x9c   : > { %613 = vmatprep.subr.bf16.mxu0 %v612_v5 }
  0x9f   : > { %615 = vmatpush1.bf16.msra.mxu0 %v614_v10 }
  0xa0   : > { %617 = vmatprep.subr.bf16.mxu0 %v616_v11 }
  0xa3   : > { %619 = vmatpush1.bf16.msra.mxu0 %v618_v16 }
  0xa4   : > { %621 = vmatprep.subr.bf16.mxu0 %v620_v17 }
  0xa7   : > { %623 = vmatpush1.bf16.msra.mxu0 %v622_v22 }
  0xa8   : > { %625 = vmatprep.subr.bf16.mxu0 %v624_v23 }
  0xab   : > { %627 = vmatpush1.bf16.msra.mxu0 %v626_v28 }
  0xac   : > { %629 = vmatprep.subr.bf16.mxu0 %v628_v29 }
  0xaf   : > { %631 = vmatpush1.bf16.msra.mxu0 %v630_v32 }
  0xb2   : > { %405 = vmatmul.mubr.f32.vlgmr.msra.gmra.mrb[0].mxu0 %v262_v33 }
 0x185   : > { %v406_v41 = vpop.f32.mrb[0].mxu0 }
 0x186   : > { %v407_v42 = vadd.f32 %v406_v41, %v333_v39  ;;  %v408_v43 = vpop.f32.mrb[1].mxu0 }
 0x187   : > { %v409_v44 = vadd.f32 %v408_v43, %v337_v40 }
 0x188   : > { %411 = vst [vmem:[%s254_s22] sm:$0xff] %v407_v42 }
 0x189   : > { %412 = vst [vmem:[%s254_s22 + $0x8] sm:$0xff] %v409_v44 }
 0x18a   : > { %840 = shalt.err (!%p837_p10)
}
 0x18b   : > { %s841_s15 = scalar_lea.hbm %s1332_s26, 256  ;;  %s845_s24 = scalar_lea.hbm %s1412_s3, 3072 }
 0x18c   : > { %p842_p6 = scmp.ne.s32.totalorder %s1332_s26, %s841_s15  ;;  %p846_p13 = scmp.lt.u32.totalorder %s1332_s26, %s1412_s3 }
 0x18d   : > { %p847_p11 = scmp.lt.u32.totalorder %s845_s24, %s841_s15  ;;  %p849_p5 = scmp.lt.u32.totalorder %s841_s15, %s1332_s26 }
 0x18e   : > { %p843_p4 = pnand %p842_p6, %p1443_p12 }
 0x18f   : > { %p848_p1 = por %p847_p11, %p846_p13 }
 0x190   : > { %p844_p3 = pneg %p843_p4 }
 0x191   : > { %p850_p7 = por %p849_p5, %p848_p1 }
 0x193   : > { %p851_p0 = pnand %p850_p7, %p844_p3 }
 0x195   : > { %854 = shalt.err (!%p851_p0)
}
 0x196   : > { %637 = dma.vmem_to_hbm [thread:$0]  (%p1443_p12), %s1334_s11, 256, %s1332_s26, %s414_s21  }
 0x197 PF: > { %p651_p2 = scmp.ge.s32.totalorder %s977_s25, 2  ;;  %s442_s5 = sand.u32 1, %s925_s12  }
 0x198   : > { %p1444_p9 = scmp.ne.s32.totalorder %s1434_s4, 0  ;;  %s443_s29 = scalar_lea.sflag [#allocation4], %s442_s5 }
 0x19a   : > { %p647_p8 = pnand %p651_p2, %p1444_p9 }
 0x19c   : > { %920 = dma.done.wait (!%p647_p8), %s443_s29, 256  }
 0x19d   : > { %922 = vsyncadd (!%p647_p8), %s443_s29, 4294967040  ;;  %s22_s25 = sadd.s32 1, %s977_s25   ;;  %s1446_s9 = sld [smem:[#allocation17_spill]] }
 0x19e   : > { %p1362_p10 = scmp.ge.s32.totalorder %s22_s25, 14   ;;  %s1447_s11 = sld [smem:[#allocation16_spill]] }
 0x19f   : > { %s1448_s8 = sld [smem:[#allocation15_spill]]  ;;  %s1449_s21 = sld [smem:[#allocation11_spill]] }
 0x1a0   : > { %s1450_s4 = sld [smem:[#allocation12_spill]]  ;;  %s1451_s23 = sld [smem:[#allocation13_spill]] }
 0x1a1   : > { %s1452_s24 = sld [smem:[#allocation14_spill]]  ;;  %s1454_s12 = smov %s929_s13 }
 0x1a2   : > { %s1455_s13 = smov %s933_s14  ;;  %s1457_s15 = smov %s941_s16 }
 0x1a3   : > { %s1456_s14 = smov %s1446_s9  ;;  %s1458_s16 = smov %s945_s17 }
 0x1a4   : > { %s1459_s17 = smov %s1447_s11  ;;  %s1460_s18 = smov %s953_s19 }
 0x1a5   : > { %s1461_s19 = smov %s957_s20  ;;  %s1462_s20 = smov %s1448_s8 }
 0x1a6   : > { %s1463_s22 = smov %s1450_s4  ;;  %21 = sbr.rel (!%p1362_p10) target bundleno = 14 (0xe), region = 93 }
 0x1ad   :  { %448 = vsyncpa [#allocation3], 1 }
 0x1ae   :  { %450 = vsyncpa [#allocation3 + $0x1], 1 }
 0x1af   :  { %451 = vsyncpa [#allocation6], 1 }
 0x1b0   :  { %453 = vsyncpa [#allocation6 + $0x1], 1 }
 0x1b1   :  { %454 = vsyncpa [#allocation4], 1 }
 0x1b2   :  { %456 = vsyncpa [#allocation4 + $0x1], 1 }

</bundles_post_ra>
